<compile_context>
chip_gen: v6e
topology: v6e:2x2x1
jax: 0.10.0
libtpu: 0.0.40
codegen_flags: <defaults>
</compile_context>

<pallas_src>
import functools

import jax
import jax.numpy as jnp
from jax.experimental import pallas as pl
from jax.experimental.pallas import tpu as pltpu


def _mhsa_kernel(x_ref, wqkv_ref, bqkv_ref, wo_ref, bo_ref, o_ref,
                 *, batch, seq, embed, num_heads, head_dim):
    # Fused Q|K|V projection: (B*S, 3E) @ block-diag(wq*s, wk, wv) + bias.
    qkv = jnp.dot(x_ref[...], wqkv_ref[...],
                  preferred_element_type=jnp.float32) + bqkv_ref[...]     # (BS, 3E)
    qkv = qkv.reshape(batch, seq, 3 * embed)   # leading-dim split; layout-free

    # TODO(synk): optional additive mask (mask * -10000.0) not wired; module default is mask=None.
    head_ctx = []
    for h in range(num_heads):
        q_lo = h * head_dim
        k_lo = embed + h * head_dim
        v_lo = 2 * embed + h * head_dim
        qh = qkv[:, :, q_lo:q_lo + head_dim]       # (B, S, Dh); 1/sqrt(Dh) pre-folded
        kh = qkv[:, :, k_lo:k_lo + head_dim]       # (B, S, Dh)
        vh = qkv[:, :, v_lo:v_lo + head_dim]       # (B, S, Dh)

        scores = jnp.einsum('bqd,bkd->bqk', qh, kh,
                            preferred_element_type=jnp.float32)           # (B, S, S)
        scores = scores - jnp.max(scores, axis=-1, keepdims=True)
        e = jnp.exp(scores)
        inv_den = pl.reciprocal(jnp.sum(e, axis=-1, keepdims=True), approx=True)
        weights = e * inv_den

        head_ctx.append(jnp.einsum('bqk,bkd->bqd', weights, vh,
                                   preferred_element_type=jnp.float32))   # (B, S, Dh)

    attn = jnp.concatenate(head_ctx, axis=-1).reshape(batch * seq, embed)  # (BS, E)

    out = jnp.dot(attn, wo_ref[...], preferred_element_type=jnp.float32) + bo_ref[...]
    o_ref[...] = out.astype(o_ref.dtype)


@functools.partial(jax.jit, static_argnames=("num_heads",))
def multi_head_self_attention(queries, keys, values, params, *, num_heads):
    """queries/keys/values: [B, S, E] float32.

    params: dict with pre-transposed weights wq/wk/wv/wo of shape [E_in, E_out]
    (so y = x @ W + b, equivalent to nn.Linear's x @ W.T + b) and biases [1, E].
    """
    B, S, E = queries.shape
    Dh = E // num_heads
    BS = B * S

    inv_scale = 1.0 / jnp.sqrt(jnp.float32(Dh))

    # Block-diagonal fused QKV weight (softmax scale folded into the Q block).
    w_qkv = jnp.zeros((3 * E, 3 * E), jnp.float32)
    w_qkv = w_qkv.at[0:E, 0:E].set(params["wq"] * inv_scale)
    w_qkv = w_qkv.at[E:2 * E, E:2 * E].set(params["wk"])
    w_qkv = w_qkv.at[2 * E:, 2 * E:].set(params["wv"])
    b_qkv = jnp.concatenate(
        [params["bq"] * inv_scale, params["bk"], params["bv"]], axis=-1)   # (1, 3E)

    # [queries | keys | values] concatenated along features -> one projection matmul.
    x_cat = jnp.concatenate(
        [queries.reshape(BS, E), keys.reshape(BS, E), values.reshape(BS, E)],
        axis=-1)                                                            # (BS, 3E)

    kernel = functools.partial(
        _mhsa_kernel, batch=B, seq=S, embed=E, num_heads=num_heads, head_dim=Dh)

    vmem = pl.BlockSpec(memory_space=pltpu.MemorySpace.VMEM)
    out = pl.pallas_call(
        kernel,
        out_shape=jax.ShapeDtypeStruct((BS, E), queries.dtype),
        in_specs=[vmem, vmem, vmem, vmem, vmem],
        out_specs=vmem,
    )(x_cat, w_qkv, b_qkv, params["wo"], params["bo"])
    return out.reshape(B, S, E)


def _reference(queries, keys, values, params, *, num_heads):
    """Pure-JAX mirror of the PyTorch forward for verification."""
    B, S, E = queries.shape
    Dh = E // num_heads
    Q = queries @ params["wq"] + params["bq"][0]
    K = keys @ params["wk"] + params["bk"][0]
    V = values @ params["wv"] + params["bv"][0]
    Q = Q.reshape(B, S, num_heads, Dh).transpose(0, 2, 1, 3)
    K = K.reshape(B, S, num_heads, Dh).transpose(0, 2, 1, 3)
    V = V.reshape(B, S, num_heads, Dh).transpose(0, 2, 1, 3)
    scores = jnp.einsum("bhqd,bhkd->bhqk", Q, K) / jnp.sqrt(jnp.float32(Dh))
    w = jax.nn.softmax(scores, axis=-1)
    out = jnp.einsum("bhqk,bhkd->bhqd", w, V)
    out = out.transpose(0, 2, 1, 3).reshape(B, S, E)
    return out @ params["wo"] + params["bo"][0]


if __name__ == "__main__":
    B, S, E, H = 2, 8, 32, 4

    key = jax.random.PRNGKey(0)
    keys_ = jax.random.split(key, 11)

    # Deterministic parameter init (PyTorch Linear-style uniform bound).
    bound = 1.0 / jnp.sqrt(jnp.float32(E))
    def u(k, shape):
        return jax.random.uniform(k, shape, jnp.float32, -bound, bound)

    params = {
        "wq": u(keys_[0], (E, E)), "bq": u(keys_[1], (1, E)),
        "wk": u(keys_[2], (E, E)), "bk": u(keys_[3], (1, E)),
        "wv": u(keys_[4], (E, E)), "bv": u(keys_[5], (1, E)),
        "wo": u(keys_[6], (E, E)), "bo": u(keys_[7], (1, E)),
    }

    queries = jax.random.normal(keys_[8], (B, S, E), jnp.float32)
    kk = jax.random.normal(keys_[9], (B, S, E), jnp.float32)
    vv = jax.random.normal(keys_[10], (B, S, E), jnp.float32)

    out = multi_head_self_attention(queries, kk, vv, params, num_heads=H)
    out = jax.block_until_ready(out)

    ref = _reference(queries, kk, vv, params, num_heads=H)
    assert out.shape == (B, S, E)
    # Tolerance relaxed vs exact f32 softmax because the kernel uses the
    # approximate EUP reciprocal for the softmax denominator.
    assert jnp.allclose(out, ref, atol=2e-3, rtol=2e-3), "mismatch vs reference"

    print("KERNEL_OK")
</pallas_src>

<mosaic_0001>
module attributes {stable_mosaic.version = 11 : i64} {
  func.func @_mhsa_kernel(%arg0: memref<16x96xf32, #tpu.memory_space<vmem>>, %arg1: memref<96x96xf32, #tpu.memory_space<vmem>>, %arg2: memref<1x96xf32, #tpu.memory_space<vmem>>, %arg3: memref<32x32xf32, #tpu.memory_space<vmem>>, %arg4: memref<1x32xf32, #tpu.memory_space<vmem>>, %arg5: memref<16x32xf32, #tpu.memory_space<vmem>>) attributes {dimension_semantics = [], scalar_prefetch = 0 : i64, scratch_operands = 0 : i64, tpu.core_type = #tpu.core_type<tc>} {
    %c0 = arith.constant 0 : index
    %c0_0 = arith.constant 0 : index
    %0 = vector.load %arg0[%c0, %c0_0] : memref<16x96xf32, #tpu.memory_space<vmem>>, vector<16x96xf32>
    %c0_1 = arith.constant 0 : index
    %c0_2 = arith.constant 0 : index
    %1 = vector.load %arg1[%c0_1, %c0_2] : memref<96x96xf32, #tpu.memory_space<vmem>>, vector<96x96xf32>
    %cst = arith.constant dense<0.000000e+00> : vector<16x96xf32>
    %2 = tpu.matmul %0, %1, %cst {dimension_numbers = #tpu.dot_dimension_numbers<[1], [0], [0], [1], [0, 0, 1, 1], [], []>} : vector<16x96xf32>, vector<96x96xf32>, vector<16x96xf32> -> vector<16x96xf32>
    %c0_3 = arith.constant 0 : index
    %c0_4 = arith.constant 0 : index
    %3 = vector.load %arg2[%c0_3, %c0_4] : memref<1x96xf32, #tpu.memory_space<vmem>>, vector<1x96xf32>
    %4 = vector.broadcast %3 : vector<1x96xf32> to vector<16x96xf32>
    %5 = arith.addf %2, %4 : vector<16x96xf32>
    %6 = vector.shape_cast %5 : vector<16x96xf32> to vector<2x8x96xf32>
    %7 = vector.extract_strided_slice %6 {offsets = [0, 0, 0], sizes = [2, 8, 8], strides = [1, 1, 1]} : vector<2x8x96xf32> to vector<2x8x8xf32>
    %8 = vector.extract_strided_slice %6 {offsets = [0, 0, 32], sizes = [2, 8, 8], strides = [1, 1, 1]} : vector<2x8x96xf32> to vector<2x8x8xf32>
    %9 = vector.extract_strided_slice %6 {offsets = [0, 0, 64], sizes = [2, 8, 8], strides = [1, 1, 1]} : vector<2x8x96xf32> to vector<2x8x8xf32>
    "tpu.trace_start"() <{level = 10 : i32, message = "bqd,bkd->bqk"}> : () -> ()
    %cst_5 = arith.constant dense<0.000000e+00> : vector<2x8x8xf32>
    %10 = tpu.matmul %7, %8, %cst_5 {dimension_numbers = #tpu.dot_dimension_numbers<[2], [2], [1], [1], [0, 0, 0, 1, 1, 1], [0], [0]>} : vector<2x8x8xf32>, vector<2x8x8xf32>, vector<2x8x8xf32> -> vector<2x8x8xf32>
    "tpu.trace_stop"() : () -> ()
    %cst_6 = arith.constant dense<0xFF800000> : vector<2x8xf32>
    %11 = vector.multi_reduction <maximumf>, %10, %cst_6 [2] : vector<2x8x8xf32> to vector<2x8xf32>
    %12 = vector.shape_cast %11 : vector<2x8xf32> to vector<2x8x1xf32>
    %13 = vector.broadcast %12 : vector<2x8x1xf32> to vector<2x8x8xf32>
    %14 = arith.subf %10, %13 : vector<2x8x8xf32>
    %15 = math.exp %14 : vector<2x8x8xf32>
    %cst_7 = arith.constant dense<0.000000e+00> : vector<2x8xf32>
    %16 = vector.multi_reduction <add>, %15, %cst_7 [2] : vector<2x8x8xf32> to vector<2x8xf32>
    %17 = vector.shape_cast %16 : vector<2x8xf32> to vector<2x8x1xf32>
    %18 = tpu.reciprocal %17 {approx = true} : vector<2x8x1xf32> -> vector<2x8x1xf32>
    %19 = vector.broadcast %18 : vector<2x8x1xf32> to vector<2x8x8xf32>
    %20 = arith.mulf %15, %19 : vector<2x8x8xf32>
    "tpu.trace_start"() <{level = 10 : i32, message = "bqk,bkd->bqd"}> : () -> ()
    %cst_8 = arith.constant dense<0.000000e+00> : vector<2x8x8xf32>
    %21 = tpu.matmul %20, %9, %cst_8 {dimension_numbers = #tpu.dot_dimension_numbers<[2], [1], [1], [2], [0, 0, 0, 1, 1, 2], [0], [0]>} : vector<2x8x8xf32>, vector<2x8x8xf32>, vector<2x8x8xf32> -> vector<2x8x8xf32>
    "tpu.trace_stop"() : () -> ()
    %22 = vector.extract_strided_slice %6 {offsets = [0, 0, 8], sizes = [2, 8, 8], strides = [1, 1, 1]} : vector<2x8x96xf32> to vector<2x8x8xf32>
    %23 = vector.extract_strided_slice %6 {offsets = [0, 0, 40], sizes = [2, 8, 8], strides = [1, 1, 1]} : vector<2x8x96xf32> to vector<2x8x8xf32>
    %24 = vector.extract_strided_slice %6 {offsets = [0, 0, 72], sizes = [2, 8, 8], strides = [1, 1, 1]} : vector<2x8x96xf32> to vector<2x8x8xf32>
    "tpu.trace_start"() <{level = 10 : i32, message = "bqd,bkd->bqk"}> : () -> ()
    %cst_9 = arith.constant dense<0.000000e+00> : vector<2x8x8xf32>
    %25 = tpu.matmul %22, %23, %cst_9 {dimension_numbers = #tpu.dot_dimension_numbers<[2], [2], [1], [1], [0, 0, 0, 1, 1, 1], [0], [0]>} : vector<2x8x8xf32>, vector<2x8x8xf32>, vector<2x8x8xf32> -> vector<2x8x8xf32>
    "tpu.trace_stop"() : () -> ()
    %cst_10 = arith.constant dense<0xFF800000> : vector<2x8xf32>
    %26 = vector.multi_reduction <maximumf>, %25, %cst_10 [2] : vector<2x8x8xf32> to vector<2x8xf32>
    %27 = vector.shape_cast %26 : vector<2x8xf32> to vector<2x8x1xf32>
    %28 = vector.broadcast %27 : vector<2x8x1xf32> to vector<2x8x8xf32>
    %29 = arith.subf %25, %28 : vector<2x8x8xf32>
    %30 = math.exp %29 : vector<2x8x8xf32>
    %cst_11 = arith.constant dense<0.000000e+00> : vector<2x8xf32>
    %31 = vector.multi_reduction <add>, %30, %cst_11 [2] : vector<2x8x8xf32> to vector<2x8xf32>
    %32 = vector.shape_cast %31 : vector<2x8xf32> to vector<2x8x1xf32>
    %33 = tpu.reciprocal %32 {approx = true} : vector<2x8x1xf32> -> vector<2x8x1xf32>
    %34 = vector.broadcast %33 : vector<2x8x1xf32> to vector<2x8x8xf32>
    %35 = arith.mulf %30, %34 : vector<2x8x8xf32>
    "tpu.trace_start"() <{level = 10 : i32, message = "bqk,bkd->bqd"}> : () -> ()
    %cst_12 = arith.constant dense<0.000000e+00> : vector<2x8x8xf32>
    %36 = tpu.matmul %35, %24, %cst_12 {dimension_numbers = #tpu.dot_dimension_numbers<[2], [1], [1], [2], [0, 0, 0, 1, 1, 2], [0], [0]>} : vector<2x8x8xf32>, vector<2x8x8xf32>, vector<2x8x8xf32> -> vector<2x8x8xf32>
    "tpu.trace_stop"() : () -> ()
    %37 = vector.extract_strided_slice %6 {offsets = [0, 0, 16], sizes = [2, 8, 8], strides = [1, 1, 1]} : vector<2x8x96xf32> to vector<2x8x8xf32>
    %38 = vector.extract_strided_slice %6 {offsets = [0, 0, 48], sizes = [2, 8, 8], strides = [1, 1, 1]} : vector<2x8x96xf32> to vector<2x8x8xf32>
    %39 = vector.extract_strided_slice %6 {offsets = [0, 0, 80], sizes = [2, 8, 8], strides = [1, 1, 1]} : vector<2x8x96xf32> to vector<2x8x8xf32>
    "tpu.trace_start"() <{level = 10 : i32, message = "bqd,bkd->bqk"}> : () -> ()
    %cst_13 = arith.constant dense<0.000000e+00> : vector<2x8x8xf32>
    %40 = tpu.matmul %37, %38, %cst_13 {dimension_numbers = #tpu.dot_dimension_numbers<[2], [2], [1], [1], [0, 0, 0, 1, 1, 1], [0], [0]>} : vector<2x8x8xf32>, vector<2x8x8xf32>, vector<2x8x8xf32> -> vector<2x8x8xf32>
    "tpu.trace_stop"() : () -> ()
    %cst_14 = arith.constant dense<0xFF800000> : vector<2x8xf32>
    %41 = vector.multi_reduction <maximumf>, %40, %cst_14 [2] : vector<2x8x8xf32> to vector<2x8xf32>
    %42 = vector.shape_cast %41 : vector<2x8xf32> to vector<2x8x1xf32>
    %43 = vector.broadcast %42 : vector<2x8x1xf32> to vector<2x8x8xf32>
    %44 = arith.subf %40, %43 : vector<2x8x8xf32>
    %45 = math.exp %44 : vector<2x8x8xf32>
    %cst_15 = arith.constant dense<0.000000e+00> : vector<2x8xf32>
    %46 = vector.multi_reduction <add>, %45, %cst_15 [2] : vector<2x8x8xf32> to vector<2x8xf32>
    %47 = vector.shape_cast %46 : vector<2x8xf32> to vector<2x8x1xf32>
    %48 = tpu.reciprocal %47 {approx = true} : vector<2x8x1xf32> -> vector<2x8x1xf32>
    %49 = vector.broadcast %48 : vector<2x8x1xf32> to vector<2x8x8xf32>
    %50 = arith.mulf %45, %49 : vector<2x8x8xf32>
    "tpu.trace_start"() <{level = 10 : i32, message = "bqk,bkd->bqd"}> : () -> ()
    %cst_16 = arith.constant dense<0.000000e+00> : vector<2x8x8xf32>
    %51 = tpu.matmul %50, %39, %cst_16 {dimension_numbers = #tpu.dot_dimension_numbers<[2], [1], [1], [2], [0, 0, 0, 1, 1, 2], [0], [0]>} : vector<2x8x8xf32>, vector<2x8x8xf32>, vector<2x8x8xf32> -> vector<2x8x8xf32>
    "tpu.trace_stop"() : () -> ()
    %52 = vector.extract_strided_slice %6 {offsets = [0, 0, 24], sizes = [2, 8, 8], strides = [1, 1, 1]} : vector<2x8x96xf32> to vector<2x8x8xf32>
    %53 = vector.extract_strided_slice %6 {offsets = [0, 0, 56], sizes = [2, 8, 8], strides = [1, 1, 1]} : vector<2x8x96xf32> to vector<2x8x8xf32>
    %54 = vector.extract_strided_slice %6 {offsets = [0, 0, 88], sizes = [2, 8, 8], strides = [1, 1, 1]} : vector<2x8x96xf32> to vector<2x8x8xf32>
    "tpu.trace_start"() <{level = 10 : i32, message = "bqd,bkd->bqk"}> : () -> ()
    %cst_17 = arith.constant dense<0.000000e+00> : vector<2x8x8xf32>
    %55 = tpu.matmul %52, %53, %cst_17 {dimension_numbers = #tpu.dot_dimension_numbers<[2], [2], [1], [1], [0, 0, 0, 1, 1, 1], [0], [0]>} : vector<2x8x8xf32>, vector<2x8x8xf32>, vector<2x8x8xf32> -> vector<2x8x8xf32>
    "tpu.trace_stop"() : () -> ()
    %cst_18 = arith.constant dense<0xFF800000> : vector<2x8xf32>
    %56 = vector.multi_reduction <maximumf>, %55, %cst_18 [2] : vector<2x8x8xf32> to vector<2x8xf32>
    %57 = vector.shape_cast %56 : vector<2x8xf32> to vector<2x8x1xf32>
    %58 = vector.broadcast %57 : vector<2x8x1xf32> to vector<2x8x8xf32>
    %59 = arith.subf %55, %58 : vector<2x8x8xf32>
    %60 = math.exp %59 : vector<2x8x8xf32>
    %cst_19 = arith.constant dense<0.000000e+00> : vector<2x8xf32>
    %61 = vector.multi_reduction <add>, %60, %cst_19 [2] : vector<2x8x8xf32> to vector<2x8xf32>
    %62 = vector.shape_cast %61 : vector<2x8xf32> to vector<2x8x1xf32>
    %63 = tpu.reciprocal %62 {approx = true} : vector<2x8x1xf32> -> vector<2x8x1xf32>
    %64 = vector.broadcast %63 : vector<2x8x1xf32> to vector<2x8x8xf32>
    %65 = arith.mulf %60, %64 : vector<2x8x8xf32>
    "tpu.trace_start"() <{level = 10 : i32, message = "bqk,bkd->bqd"}> : () -> ()
    %cst_20 = arith.constant dense<0.000000e+00> : vector<2x8x8xf32>
    %66 = tpu.matmul %65, %54, %cst_20 {dimension_numbers = #tpu.dot_dimension_numbers<[2], [1], [1], [2], [0, 0, 0, 1, 1, 2], [0], [0]>} : vector<2x8x8xf32>, vector<2x8x8xf32>, vector<2x8x8xf32> -> vector<2x8x8xf32>
    "tpu.trace_stop"() : () -> ()
    %67 = tpu.concatenate %21, %36, %51, %66 in 2 : vector<2x8x8xf32>, vector<2x8x8xf32>, vector<2x8x8xf32>, vector<2x8x8xf32> -> vector<2x8x32xf32>
    %68 = vector.shape_cast %67 : vector<2x8x32xf32> to vector<16x32xf32>
    %c0_21 = arith.constant 0 : index
    %c0_22 = arith.constant 0 : index
    %69 = vector.load %arg3[%c0_21, %c0_22] : memref<32x32xf32, #tpu.memory_space<vmem>>, vector<32x32xf32>
    %cst_23 = arith.constant dense<0.000000e+00> : vector<16x32xf32>
    %70 = tpu.matmul %68, %69, %cst_23 {dimension_numbers = #tpu.dot_dimension_numbers<[1], [0], [0], [1], [0, 0, 1, 1], [], []>} : vector<16x32xf32>, vector<32x32xf32>, vector<16x32xf32> -> vector<16x32xf32>
    %c0_24 = arith.constant 0 : index
    %c0_25 = arith.constant 0 : index
    %71 = vector.load %arg4[%c0_24, %c0_25] : memref<1x32xf32, #tpu.memory_space<vmem>>, vector<1x32xf32>
    %72 = vector.broadcast %71 : vector<1x32xf32> to vector<16x32xf32>
    %73 = arith.addf %70, %72 : vector<16x32xf32>
    %c0_26 = arith.constant 0 : index
    %c0_27 = arith.constant 0 : index
    %74 = vector.load %arg5[%c0_26, %c0_27] : memref<16x32xf32, #tpu.memory_space<vmem>>, vector<16x32xf32>
    tpu.vector_store %arg5[%c0_26, %c0_27], %73 {strides = array<i32>} : memref<16x32xf32, #tpu.memory_space<vmem>>, vector<16x32xf32>,
    return
  }
}

</mosaic_0001>

<bundles_post_ra>
// kernel: multi_head_self_attention.1
= control target key start
LH: loop header
LB: loop body
LE: loop exit
PB: predicated region body
PF: predicated region fallthrough
CT: control target
= control target key end

     0   :  { %vm42_vm0 = vcmask 785408   ;;  %s2108_s0 = inlined_call_operand.vmem [shape: f32[16,96], index: 0, kind: input, shape index: {}]   ;;  %s2109_s1 = inlined_call_operand.vmem [shape: f32[96,96], index: 1, kind: input, shape index: {}]   ;;  %s2110_s2 = inlined_call_operand.vmem [shape: f32[1,96], index: 2, kind: input, shape index: {}]   ;;  %s2111_s3 = inlined_call_operand.vmem [shape: f32[32,32], index: 3, kind: input, shape index: {}]   ;;  %s2112_s4 = inlined_call_operand.vmem [shape: f32[1,32], index: 4, kind: input, shape index: {}]   ;;  %s2113_s5 = inlined_call_operand.hbm [shape: f32[16,32], index: 5, kind: output, shape index: {}]  }
   0x1   :  { %v34_v0 = vld [vmem:[%s2109_s1 + $0x58] sm:$0xff]  ;;  %v33_v1 = vld [vmem:[%s2109_s1 + $0x50] sm:$0xff]  ;;  %v32_v2 = vld [vmem:[%s2109_s1 + $0x48] sm:$0xff] }
   0x2   :  { %1668 = vmatprep.subr.mxu0 %v34_v0  ;;  %v31_v3 = vld [vmem:[%s2109_s1 + $0x40] sm:$0xff] }
   0x3   :  { %1669 = vmatpush3.msra.mxu0 %v34_v0  ;;  %v21_v4 = vld [vmem:[%s2108_s0] sm:$0xff] }
   0x4   :  { %1670 = vmatprep.subr.mxu0 %v33_v1 }
   0x5   :  { %1671 = vmatpush3.msra.mxu0 %v33_v1 }
   0x6   :  { %10 = vsyncpa [#allocation3], 0  ;;  %1672 = vmatprep.subr.mxu0 %v32_v2  ;;  %1692 = vmatprep.mubr.msk.f32.mxu0 %vm42_vm0, %v21_v4  ;;  %v30_v5 = vld [vmem:[%s2109_s1 + $0x38] sm:$0xff]  ;;  %v29_v6 = vld [vmem:[%s2109_s1 + $0x30] sm:$0xff]  ;;  %v1858_v14 = vmov 0.0   ;;  %vm1859_vm1 = vmmov 0  }
   0x7   :  { %1673 = vmatpush3.msra.mxu0 %v32_v2  ;;  %v28_v7 = vld [vmem:[%s2109_s1 + $0x28] sm:$0xff]  ;;  %v27_v8 = vld [vmem:[%s2109_s1 + $0x20] sm:$0xff]  ;;  %v26_v9 = vld [vmem:[%s2109_s1 + $0x18] sm:$0xff]  ;;  %1695 = vmatprep.subr.mxu1 %v1858_v14  ;;  %vm127_vm2 = vcmask 64512   ;;  %s1862_s22 = smov 88   ;;  %s1863_s23 = smov 120  }
   0x8   :  { %1674 = vmatprep.subr.mxu0 %v31_v3  ;;  %v25_v10 = vld [vmem:[%s2109_s1 + $0x10] sm:$0xff]  ;;  %v24_v11 = vld [vmem:[%s2109_s1 + $0x8] sm:$0xff]  ;;  %v23_v12 = vld [vmem:[%s2109_s1] sm:$0xff]  ;;  %1697 = vmatprep.mubr.msk.f32.mxu1 %vm1859_vm1, %v1858_v14  ;;  %s1864_s24 = smov 56   ;;  %s1865_s25 = smov 80   ;;  %vm1472_vm3 = vcmask 195584  }
   0x9   :  { %1675 = vmatpush3.msra.mxu0 %v31_v3  ;;  %v22_v13 = vld [vmem:[%s2108_s0 + $0x8] sm:$0xff]  ;;  %v1586_v16 = vld [vmem:[%s2110_s2] ss:$0 sm:$0xff]  ;;  %s1860_s0 = smov 96   ;;  %s1861_s2 = smov 64   ;;  %vm1469_vm4 = vcmask 130048  }
   0xa   :  { %1676 = vmatprep.subr.mxu0 %v30_v5  ;;  %s1866_s26 = smov 112   ;;  %s1867_s27 = smov 48   ;;  %vm1486_vm5 = vcmask 261120  }
   0xb   :  { %1677 = vmatpush3.msra.mxu0 %v30_v5  ;;  %s1868_s28 = smov 72   ;;  %s1869_s29 = smov 104  }
   0xc   :  { %1678 = vmatprep.subr.mxu0 %v29_v6  ;;  %s1870_s30 = smov 40   ;;  %s1871_s6 = smov 8  }
   0xd   :  { %1679 = vmatpush3.msra.mxu0 %v29_v6  ;;  %s1872_s7 = smov 16   ;;  %s1873_s16 = smov 24  }
   0xe   :  { %1680 = vmatprep.subr.mxu0 %v28_v7  ;;  %s1874_s18 = smov [#allocation2]  }
   0xf   :  { %1681 = vmatpush3.msra.mxu0 %v28_v7  ;;  %s1575_s19 = sshll.u32 %s1874_s18, 4  ;;  %s1576_s19 = int_to_ptr.vmem [resolvable:$true] %s1575_s19 }
  0x10   :  { %1682 = vmatprep.subr.mxu0 %v27_v8  ;;  %s1836_s20 = scalar_lea.vmem %s1576_s19, 256  ;;  %p1841_p1 = scmp.lt.s32.totalorder %s1576_s19, %s1576_s19 }
  0x11   :  { %1683 = vmatpush3.msra.mxu0 %v27_v8  ;;  %p1837_p0 = scmp.ne.s32.totalorder %s1576_s19, %s1836_s20  ;;  %p1842_p2 = scmp.lt.s32.totalorder %s1836_s20, %s1836_s20 }
  0x12   :  { %1684 = vmatprep.subr.mxu0 %v26_v9 }
  0x13   :  { %1685 = vmatpush3.msra.mxu0 %v26_v9  ;;  %p1843_p3 = por %p1842_p2, %p1841_p1 }
  0x14   :  { %1686 = vmatprep.subr.mxu0 %v25_v10 }
  0x15   :  { %1687 = vmatpush3.msra.mxu0 %v25_v10  ;;  %p1844_p4 = pnand %p1843_p3, %p1837_p0 }
  0x16   :  { %1688 = vmatprep.subr.mxu0 %v24_v11 }
  0x17   :  { %1689 = vmatpush3.msra.mxu0 %v24_v11 }
  0x18   :  { %1690 = vmatprep.subr.mxu0 %v23_v12 }
  0x19   :  { %1691 = vmatpush3.msra.mxu0 %v23_v12 }
  0x1a   :  { %1693 = vmatmul.mubr.msk.f32.vlgmr.msra.gmra.mxu0 %vm42_vm0, %v22_v13  ;;  %1735 = vmatprep.subr.mxu0 %v1858_v14 }
  0x1b   :  { %1737 = vmatprep.mubr.msk.f32.mxu0 %vm1859_vm1, %v1858_v14 }
  0xda   :  { %v1694_v15 = vpop.f32.mrf.mxu0 }
  0xdb   :  { %v1962_v19 = vadd.f32 %v1694_v15, %v1586_v16 }
  0xdc   :  { %v115_v17 = vpop.f32.mrf.mxu0 }
  0xdd   :  { %v1959_v18 = vadd.f32 %v1586_v16, %v115_v17 }
  0xdf   :  { %125 = vrot.lane.b32.xlu0 %v1959_v18, %s1860_s0 }
  0xe3   :  { %203 = vrot.lane.b32.xlu0 %v1962_v19, %s1860_s0 }
 0x151   :  { %v126_v20 = vpop.permute.xlu0 %125 }
 0x152   :  { %1696 = vmatpush3.xpose.msk.msra.mxu1 %vm127_vm2, %v126_v20 }
 0x153   :  { %1700 = vmatprep.subr.mxu1 %v1858_v14 }
 0x155   :  { %1698 = vmatmul.mubr.msk.f32.vlgmr.msra.gmra.mxu1 %vm127_vm2, %v1959_v18  ;;  %v204_v21 = vpop.permute.xlu0 %203 }
 0x156   :  { %1701 = vmatpush3.xpose.msk.msra.mxu1 %vm127_vm2, %v204_v21  ;;  %1702 = vmatprep.mubr.msk.f32.mxu1 %vm1859_vm1, %v1858_v14 }
 0x157   :  { %1705 = vmatprep.subr.mxu1 %v1858_v14 }
 0x159   :  { %1703 = vmatmul.mubr.msk.f32.vlgmr.msra.gmra.mxu1 %vm127_vm2, %v1962_v19 }
 0x15a   :  { %1707 = vmatprep.mubr.msk.f32.mxu1 %vm1859_vm1, %v1858_v14 }
 0x215   :  { %v198_v22 = vpop.f32.mrf.mxu1 }
 0x216   :  { %v279_v23 = vsel %vm127_vm2, %v198_v22, -inf }
 0x217   :  { %280 = vmax.xlane.f32.xlu1 %v279_v23  ;;  %v1699_v24 = vpop.f32.mrf.mxu1 }
 0x219   :  { %v275_v25 = vpop.f32.mrf.mxu1 }
 0x21a   :  { %v282_v26 = vsel %vm127_vm2, %v275_v25, -inf }
 0x21b   :  { %283 = vmax.xlane.f32.xlu1 %v282_v26  ;;  %v1704_v27 = vpop.f32.mrf.mxu1 }
 0x22c   :  { %301 = vrot.lane.b32.xlu1 %v1959_v18, %s1861_s2 }
 0x230   :  { %377 = vrot.lane.b32.xlu1 %v1962_v19, %s1861_s2 }
 0x234   :  { %455 = vrot.lane.b32.xlu1 %v1959_v18, %s1862_s22 }
 0x238   :  { %453 = vrot.lane.b32.xlu1 %v1959_v18, %s1863_s23 }
 0x2a0   :  { %v281_v28 = vpop.xlane.xlu1 %280 }
 0x2a1   :  { %v285_v29 = vsub.f32 %v198_v22, %v281_v28 }
 0x2a3   :  { %v287_v30 = vmul.f32 1.442695, %v285_v29 }
 0x2a4   :  { %v284_v31 = vpop.xlane.xlu1 %283 }
 0x2a5   :  { %1804 = vpow2.f32 %v287_v30  ;;  %v286_v32 = vsub.f32 %v275_v25, %v284_v31 }
 0x2a7   :  { %v289_v33 = vmul.f32 1.442695, %v286_v32 }
 0x2a8   :  { %v302_v34 = vpop.permute.xlu1 %301 }
 0x2a9   :  { %1806 = vpow2.f32 %v289_v33  ;;  %1706 = vmatpush3.msra.mxu1 %v302_v34 }
 0x2aa   :  { %1710 = vmatprep.subr.mxu1 %v1858_v14 }
 0x2ac   :  { %v378_v39 = vpop.permute.xlu1 %377 }
 0x2b0   :  { %v456_v40 = vpop.permute.xlu1 %455 }
 0x2b2   :  { %v1805_v35 = vpop.eup %1804 }
 0x2b3   :  { %v291_v36 = vsel %vm127_vm2, %v1805_v35, 0.0 }
 0x2b4   :  { %292 = vadd.xlane.f32.xlu0 %v291_v36  ;;  %v454_v41 = vpop.permute.xlu1 %453 }
 0x2b6   :  { %v1807_v37 = vpop.eup %1806 }
 0x2b7   :  { %v294_v38 = vsel %vm127_vm2, %v1807_v37, 0.0 }
 0x2b8   :  { %295 = vadd.xlane.f32.xlu1 %v294_v38 }
 0x2c9   :  { %531 = vrot.lane.b32.xlu1 %v1962_v19, %s1863_s23 }
 0x2ca   :  { %533 = vrot.lane.b32.xlu0 %v1962_v19, %s1862_s22 }
 0x33d   :  { %v293_v42 = vpop.xlane.xlu0 %292 }
 0x33e   :  { %1808 = vrcp.f32 %v293_v42 }
 0x341   :  { %v296_v43 = vpop.xlane.xlu1 %295  ;;  %v534_v48 = vpop.permute.xlu0 %533 }
 0x342   :  { %1810 = vrcp.f32 %v296_v43 }
 0x345   :  { %v532_v49 = vpop.permute.xlu1 %531 }
 0x34b   :  { %v1809_v44 = vpop.eup %1808 }
 0x34c   :  { %v299_v45 = vmul.f32 %v1809_v44, %v1805_v35 }
 0x34e   :  { %1708 = vmatmul.mubr.msk.f32.vlgmr.msra.gmra.mxu1 %vm127_vm2, %v299_v45 }
 0x34f   :  { %v1811_v46 = vpop.eup %1810  ;;  %1711 = vmatpush3.msra.mxu1 %v378_v39  ;;  %1712 = vmatprep.mubr.msk.f32.mxu1 %vm1859_vm1, %v1858_v14 }
 0x350   :  { %1715 = vmatprep.subr.mxu1 %v1858_v14  ;;  %v300_v47 = vmul.f32 %v1811_v46, %v1807_v37 }
 0x352   :  { %1713 = vmatmul.mubr.msk.f32.vlgmr.msra.gmra.mxu1 %vm127_vm2, %v300_v47 }
 0x353   :  { %1716 = vmatpush3.xpose.msk.msra.mxu1 %vm127_vm2, %v456_v40  ;;  %1717 = vmatprep.mubr.msk.f32.mxu1 %vm1859_vm1, %v1858_v14 }
 0x354   :  { %1720 = vmatprep.subr.mxu1 %v1858_v14 }
 0x356   :  { %1718 = vmatmul.mubr.msk.f32.vlgmr.msra.gmra.mxu1 %vm127_vm2, %v454_v41 }
 0x357   :  { %1721 = vmatpush3.xpose.msk.msra.mxu1 %vm127_vm2, %v534_v48  ;;  %1722 = vmatprep.mubr.msk.f32.mxu1 %vm1859_vm1, %v1858_v14 }
 0x358   :  { %1725 = vmatprep.subr.mxu1 %v1858_v14 }
 0x35a   :  { %1723 = vmatmul.mubr.msk.f32.vlgmr.msra.gmra.mxu1 %vm127_vm2, %v532_v49 }
 0x35b   :  { %1727 = vmatprep.mubr.msk.f32.mxu1 %vm1859_vm1, %v1858_v14 }
 0x40e   :  { %v2005_v50 = vpop.f32.mrf.mxu1 }
 0x410   :  { %v1709_v51 = vpop.f32.mrf.mxu1 }
 0x412   :  { %v2007_v52 = vpop.f32.mrf.mxu1 }
 0x414   :  { %v1714_v53 = vpop.f32.mrf.mxu1 }
 0x416   :  { %v527_v54 = vpop.f32.mrf.mxu1 }
 0x417   :  { %v609_v55 = vsel %vm127_vm2, %v527_v54, -inf }
 0x418   :  { %610 = vmax.xlane.f32.xlu1 %v609_v55  ;;  %v1719_v56 = vpop.f32.mrf.mxu1 }
 0x41a   :  { %v605_v57 = vpop.f32.mrf.mxu1 }
 0x41b   :  { %v612_v58 = vsel %vm127_vm2, %v605_v57, -inf }
 0x41c   :  { %613 = vmax.xlane.f32.xlu0 %v612_v58  ;;  %v1724_v59 = vpop.f32.mrf.mxu1 }
 0x429   :  { %631 = vrot.lane.b32.xlu1 %v1959_v18, %s1864_s24 }
 0x42d   :  { %785 = vrot.lane.b32.xlu1 %v1959_v18, %s1865_s25 }
 0x431   :  { %863 = vrot.lane.b32.xlu1 %v1962_v19, %s1865_s25 }
 0x432   :  { %707 = vrot.lane.b32.xlu0 %v1962_v19, %s1864_s24 }
 0x436   :  { %783 = vrot.lane.b32.xlu0 %v1959_v18, %s1866_s26 }
 0x4a1   :  { %v611_v60 = vpop.xlane.xlu1 %610 }
 0x4a2   :  { %v615_v61 = vsub.f32 %v527_v54, %v611_v60 }
 0x4a4   :  { %v617_v62 = vmul.f32 1.442695, %v615_v61 }
 0x4a5   :  { %v632_v63 = vpop.permute.xlu1 %631  ;;  %v614_v0 = vpop.xlane.xlu0 %613 }
 0x4a6   :  { %1812 = vpow2.f32 %v617_v62  ;;  %v616_v1 = vsub.f32 %v605_v57, %v614_v0  ;;  %1726 = vmatpush3.msra.mxu1 %v632_v63 }
 0x4a7   :  { %1730 = vmatprep.subr.mxu1 %v1858_v14 }
 0x4a8   :  { %v619_v2 = vmul.f32 1.442695, %v616_v1 }
 0x4a9   :  { %v786_v3 = vpop.permute.xlu1 %785  ;;  %v708_v4 = vpop.permute.xlu0 %707 }
 0x4aa   :  { %1814 = vpow2.f32 %v619_v2  ;;  %1736 = vmatpush3.xpose.msk.msra.mxu0 %vm127_vm2, %v786_v3 }
 0x4ab   :  { %1745 = vmatprep.subr.mxu0 %v1858_v14 }
 0x4ad   :  { %v784_v5 = vpop.permute.xlu0 %783  ;;  %v864_v10 = vpop.permute.xlu1 %863 }
 0x4ae   :  { %1738 = vmatmul.mubr.msk.f32.vlgmr.msra.gmra.mxu0 %vm127_vm2, %v784_v5 }
 0x4af   :  { %1747 = vmatprep.mubr.msk.f32.mxu0 %vm1859_vm1, %v1858_v14 }
 0x4b3   :  { %v1813_v6 = vpop.eup %1812 }
 0x4b4   :  { %v621_v7 = vsel %vm127_vm2, %v1813_v6, 0.0 }
 0x4b5   :  { %622 = vadd.xlane.f32.xlu1 %v621_v7 }
 0x4b7   :  { %v1815_v8 = vpop.eup %1814 }
 0x4b8   :  { %v624_v9 = vsel %vm127_vm2, %v1815_v8, 0.0 }
 0x4b9   :  { %625 = vadd.xlane.f32.xlu1 %v624_v9 }
 0x4ca   :  { %861 = vrot.lane.b32.xlu1 %v1962_v19, %s1866_s26 }
 0x53e   :  { %v623_v11 = vpop.xlane.xlu1 %622 }
 0x53f   :  { %1816 = vrcp.f32 %v623_v11 }
 0x542   :  { %v626_v12 = vpop.xlane.xlu1 %625 }
 0x543   :  { %1818 = vrcp.f32 %v626_v12 }
 0x546   :  { %v862_v20 = vpop.permute.xlu1 %861 }
 0x54c   :  { %v1817_v13 = vpop.eup %1816 }
 0x54d   :  { %v629_v15 = vmul.f32 %v1817_v13, %v1813_v6 }
 0x54f   :  { %1728 = vmatmul.mubr.msk.f32.vlgmr.msra.gmra.mxu1 %vm127_vm2, %v629_v15 }
 0x550   :  { %v1819_v16 = vpop.eup %1818  ;;  %1731 = vmatpush3.msra.mxu1 %v708_v4  ;;  %1732 = vmatprep.mubr.msk.f32.mxu1 %vm1859_vm1, %v1858_v14 }
 0x551   :  { %1740 = vmatprep.subr.mxu1 %v1858_v14  ;;  %v630_v17 = vmul.f32 %v1819_v16, %v1815_v8 }
 0x553   :  { %1733 = vmatmul.mubr.msk.f32.vlgmr.msra.gmra.mxu1 %vm127_vm2, %v630_v17 }
 0x554   :  { %1741 = vmatpush3.xpose.msk.msra.mxu1 %vm127_vm2, %v864_v10  ;;  %1742 = vmatprep.mubr.msk.f32.mxu1 %vm1859_vm1, %v1858_v14 }
 0x555   :  { %1750 = vmatprep.subr.mxu1 %v1858_v14 }
 0x557   :  { %1743 = vmatmul.mubr.msk.f32.vlgmr.msra.gmra.mxu1 %vm127_vm2, %v862_v20  ;;  %v1478_v20 = vld [vmem:[%s2111_s3 + $0x18] sm:$0xff] }
 0x558   :  { %1752 = vmatprep.mubr.msk.f32.mxu1 %vm1859_vm1, %v1858_v14 }
 0x56e   :  { %v857_v21 = vpop.f32.mrf.mxu0 }
 0x56f   :  { %v939_v22 = vsel %vm127_vm2, %v857_v21, -inf }
 0x570   :  { %940 = vmax.xlane.f32.xlu0 %v939_v22  ;;  %v1739_v23 = vpop.f32.mrf.mxu0  ;;  %v1475_v22 = vld [vmem:[%s2111_s3] sm:$0xff] }
 0x5f9   :  { %v941_v24 = vpop.xlane.xlu0 %940 }
 0x5fa   :  { %v945_v25 = vsub.f32 %v857_v21, %v941_v24  ;;  %v1476_v21 = vld [vmem:[%s2111_s3 + $0x8] sm:$0xff] }
 0x5fc   :  { %v947_v26 = vmul.f32 1.442695, %v945_v25 }
 0x5fe   :  { %1820 = vpow2.f32 %v947_v26 }
 0x60b   :  { %v1821_v27 = vpop.eup %1820 }
 0x60c   :  { %v951_v28 = vsel %vm127_vm2, %v1821_v27, 0.0 }
 0x60d   :  { %952 = vadd.xlane.f32.xlu0 %v951_v28 }
 0x60f   :  { %v2039_v29 = vpop.f32.mrf.mxu1 }
 0x611   :  { %v1729_v30 = vpop.f32.mrf.mxu1 }
 0x613   :  { %v2041_v31 = vpop.f32.mrf.mxu1 }
 0x615   :  { %v1734_v32 = vpop.f32.mrf.mxu1 }
 0x617   :  { %v935_v33 = vpop.f32.mrf.mxu1 }
 0x618   :  { %v942_v34 = vsel %vm127_vm2, %v935_v33, -inf }
 0x619   :  { %943 = vmax.xlane.f32.xlu1 %v942_v34  ;;  %v1744_v35 = vpop.f32.mrf.mxu1 }
 0x623   :  { %1037 = vrot.lane.b32.xlu0 %v1962_v19, %s1867_s27 }
 0x62a   :  { %961 = vrot.lane.b32.xlu1 %v1959_v18, %s1867_s27 }
 0x62e   :  { %1115 = vrot.lane.b32.xlu1 %v1959_v18, %s1868_s28 }
 0x632   :  { %1193 = vrot.lane.b32.xlu1 %v1962_v19, %s1868_s28 }
 0x636   :  { %1191 = vrot.lane.b32.xlu1 %v1962_v19, %s1869_s29 }
 0x696   :  { %v953_v36 = vpop.xlane.xlu0 %952 }
 0x697   :  { %1822 = vrcp.f32 %v953_v36 }
 0x69a   :  { %v1038_v37 = vpop.permute.xlu0 %1037 }
 0x69b   :  { %1751 = vmatpush3.msra.mxu1 %v1038_v37 }
 0x69c   :  { %1760 = vmatprep.subr.mxu1 %v1858_v14 }
 0x6a2   :  { %v944_v38 = vpop.xlane.xlu1 %943 }
 0x6a3   :  { %v946_v39 = vsub.f32 %v935_v33, %v944_v38 }
 0x6a4   :  { %v1823_v40 = vpop.eup %1822 }
 0x6a5   :  { %v949_v41 = vmul.f32 1.442695, %v946_v39  ;;  %v959_v42 = vmul.f32 %v1823_v40, %v1821_v27 }
 0x6a6   :  { %v962_v43 = vpop.permute.xlu1 %961 }
 0x6a7   :  { %1824 = vpow2.f32 %v949_v41  ;;  %1746 = vmatpush3.msra.mxu0 %v962_v43 }
 0x6a8   :  { %1748 = vmatmul.mubr.msk.f32.vlgmr.msra.gmra.mxu0 %vm127_vm2, %v959_v42  ;;  %1755 = vmatprep.subr.mxu0 %v1858_v14 }
 0x6a9   :  { %1757 = vmatprep.mubr.msk.f32.mxu0 %vm1859_vm1, %v1858_v14 }
 0x6aa   :  { %v1116_v44 = vpop.permute.xlu1 %1115 }
 0x6ab   :  { %1756 = vmatpush3.xpose.msk.msra.mxu0 %vm127_vm2, %v1116_v44 }
 0x6ac   :  { %1765 = vmatprep.subr.mxu0 %v1858_v14 }
 0x6ae   :  { %v1194_v51 = vpop.permute.xlu1 %1193 }
 0x6b2   :  { %v1192_v54 = vpop.permute.xlu1 %1191 }
 0x6b4   :  { %v1825_v45 = vpop.eup %1824 }
 0x6b5   :  { %v954_v46 = vsel %vm127_vm2, %v1825_v45, 0.0 }
 0x6b6   :  { %955 = vadd.xlane.f32.xlu0 %v954_v46 }
 0x6cc   :  { %1113 = vrot.lane.b32.xlu0 %v1959_v18, %s1869_s29 }
 0x73f   :  { %v956_v47 = vpop.xlane.xlu0 %955 }
 0x740   :  { %1826 = vrcp.f32 %v956_v47 }
 0x743   :  { %v1114_v48 = vpop.permute.xlu0 %1113 }
 0x744   :  { %1758 = vmatmul.mubr.msk.f32.vlgmr.msra.gmra.mxu0 %vm127_vm2, %v1114_v48 }
 0x745   :  { %1767 = vmatprep.mubr.msk.f32.mxu0 %vm1859_vm1, %v1858_v14 }
 0x74d   :  { %v1827_v49 = vpop.eup %1826 }
 0x74e   :  { %v960_v53 = vmul.f32 %v1827_v49, %v1825_v45 }
 0x750   :  { %1753 = vmatmul.mubr.msk.f32.vlgmr.msra.gmra.mxu1 %vm127_vm2, %v960_v53 }
 0x751   :  { %1761 = vmatpush3.xpose.msk.msra.mxu1 %vm127_vm2, %v1194_v51  ;;  %1762 = vmatprep.mubr.msk.f32.mxu1 %vm1859_vm1, %v1858_v14 }
 0x752   :  { %1770 = vmatprep.subr.mxu1 %v1858_v14 }
 0x754   :  { %1763 = vmatmul.mubr.msk.f32.vlgmr.msra.gmra.mxu1 %vm127_vm2, %v1192_v54 }
 0x755   :  { %1772 = vmatprep.mubr.msk.f32.mxu1 %vm1859_vm1, %v1858_v14 }
 0x768   :  { %v1033_v55 = vpop.f32.mrf.mxu0 }
 0x76a   :  { %v1749_v56 = vpop.f32.mrf.mxu0 }
 0x804   :  { %v1187_v57 = vpop.f32.mrf.mxu0 }
 0x805   :  { %v1269_v58 = vsel %vm127_vm2, %v1187_v57, -inf }
 0x806   :  { %1270 = vmax.xlane.f32.xlu0 %v1269_v58  ;;  %v1759_v59 = vpop.f32.mrf.mxu0 }
 0x810   :  { %v1109_v60 = vpop.f32.mrf.mxu1 }
 0x812   :  { %v1754_v61 = vpop.f32.mrf.mxu1 }
 0x814   :  { %v1265_v62 = vpop.f32.mrf.mxu1 }
 0x815   :  { %v1272_v63 = vsel %vm127_vm2, %v1265_v62, -inf }
 0x816   :  { %1273 = vmax.xlane.f32.xlu1 %v1272_v63  ;;  %v1764_v0 = vpop.f32.mrf.mxu1 }
 0x827   :  { %1291 = vrot.lane.b32.xlu1 %v1959_v18, %s1870_s30 }
 0x82b   :  { %1445 = vrot.lane.b32.xlu1 %v2039_v29, %s1871_s6 }
 0x82f   :  { %1447 = vrot.lane.b32.xlu1 %v2041_v31, %s1871_s6 }
 0x833   :  { %1455 = vrot.lane.b32.xlu1 %v1109_v60, %s1872_s7 }
 0x88f   :  { %v1271_v14 = vpop.xlane.xlu0 %1270 }
 0x890   :  { %v1275_v1 = vsub.f32 %v1187_v57, %v1271_v14 }
 0x892   :  { %v1277_v2 = vmul.f32 1.442695, %v1275_v1 }
 0x894   :  { %1828 = vpow2.f32 %v1277_v2 }
 0x89f   :  { %v1274_v3 = vpop.xlane.xlu1 %1273 }
 0x8a0   :  { %v1276_v4 = vsub.f32 %v1265_v62, %v1274_v3 }
 0x8a1   :  { %v1829_v5 = vpop.eup %1828 }
 0x8a2   :  { %v1279_v6 = vmul.f32 1.442695, %v1276_v4  ;;  %v1281_v7 = vsel %vm127_vm2, %v1829_v5, 0.0 }
 0x8a3   :  { %1282 = vadd.xlane.f32.xlu0 %v1281_v7  ;;  %v1292_v18 = vpop.permute.xlu1 %1291 }
 0x8a4   :  { %1830 = vpow2.f32 %v1279_v6  ;;  %1766 = vmatpush3.msra.mxu0 %v1292_v18 }
 0x8a5   :  { %1775 = vmatprep.subr.mxu0 %v1478_v20 }
 0x8a7   :  { %v1446_v27 = vpop.permute.xlu1 %1445 }
 0x8a8   :  { %v1467_v29 = vsel %vm127_vm2, %v2005_v50, %v1446_v27  ;;  %v1613_v50 = vld [vmem:[%s2112_s4] ss:$0 sm:$0xff] }
 0x8ab   :  { %v1448_v33 = vpop.permute.xlu1 %1447 }
 0x8ac   :  { %v1468_v35 = vsel %vm127_vm2, %v2007_v52, %v1448_v33 }
 0x8af   :  { %v1456_v34 = vpop.permute.xlu1 %1455 }
 0x8b0   :  { %v1471_v36 = vsel %vm1469_vm4, %v1468_v35, %v1456_v34 }
 0x8b1   :  { %v1831_v8 = vpop.eup %1830 }
 0x8b2   :  { %v1284_v9 = vsel %vm127_vm2, %v1831_v8, 0.0 }
 0x8b3   :  { %1285 = vadd.xlane.f32.xlu0 %v1284_v9 }
 0x8c9   :  { %1367 = vrot.lane.b32.xlu0 %v1962_v19, %s1870_s30  ;;  %v1477_v19 = vld [vmem:[%s2111_s3 + $0x10] sm:$0xff] }
 0x8cd   :  { %1453 = vrot.lane.b32.xlu0 %v1033_v55, %s1872_s7 }
 0x92c   :  { %v1283_v10 = vpop.xlane.xlu0 %1282 }
 0x92d   :  { %1832 = vrcp.f32 %v1283_v10 }
 0x93a   :  { %v1833_v11 = vpop.eup %1832 }
 0x93b   :  { %v1289_v12 = vmul.f32 %v1833_v11, %v1829_v5 }
 0x93c   :  { %v1286_v13 = vpop.xlane.xlu0 %1285 }
 0x93d   :  { %1834 = vrcp.f32 %v1286_v13  ;;  %1768 = vmatmul.mubr.msk.f32.vlgmr.msra.gmra.mxu0 %vm127_vm2, %v1289_v12 }
 0x93e   :  { %1776 = vmatpush3.msra.mxu0 %v1478_v20 }
 0x93f   :  { %1777 = vmatprep.subr.mxu0 %v1477_v19 }
 0x940   :  { %v1368_v15 = vpop.permute.xlu0 %1367  ;;  %1778 = vmatpush3.msra.mxu0 %v1477_v19 }
 0x941   :  { %1771 = vmatpush3.msra.mxu1 %v1368_v15  ;;  %1779 = vmatprep.subr.mxu0 %v1476_v21 }
 0x942   :  { %1780 = vmatpush3.msra.mxu0 %v1476_v21 }
 0x943   :  { %1781 = vmatprep.subr.mxu0 %v1475_v22 }
 0x944   :  { %1782 = vmatpush3.msra.mxu0 %v1475_v22  ;;  %v1454_v28 = vpop.permute.xlu0 %1453 }
 0x945   :  { %v1470_v30 = vsel %vm1469_vm4, %v1467_v29, %v1454_v28 }
 0x94a   :  { %v1835_v16 = vpop.eup %1834 }
 0x94b   :  { %v1290_v17 = vmul.f32 %v1835_v16, %v1831_v8 }
 0x94d   :  { %1773 = vmatmul.mubr.msk.f32.vlgmr.msra.gmra.mxu1 %vm127_vm2, %v1290_v17 }
 0x9fd   :  { %v1363_v23 = vpop.f32.mrf.mxu0 }
 0x9fe   :  { %1461 = vrot.lane.b32.xlu0 %v1363_v23, %s1873_s16 }
 0x9ff   :  { %v1769_v24 = vpop.f32.mrf.mxu0 }
 0xa0d   :  { %v1439_v25 = vpop.f32.mrf.mxu1 }
 0xa0e   :  { %1463 = vrot.lane.b32.xlu1 %v1439_v25, %s1873_s16 }
 0xa0f   :  { %v1774_v26 = vpop.f32.mrf.mxu1 }
 0xa70   :  { %v1462_v31 = vpop.permute.xlu0 %1461 }
 0xa71   :  { %v1473_v32 = vsel %vm1472_vm3, %v1470_v30, %v1462_v31 }
 0xa72   :  { %1783 = vmatprep.mubr.msk.f32.mxu0 %vm1486_vm5, %v1473_v32 }
 0xa80   :  { %v1464_v37 = vpop.permute.xlu1 %1463 }
 0xa81   :  { %v1474_v38 = vsel %vm1472_vm3, %v1471_v36, %v1464_v37 }
 0xa82   :  { %1784 = vmatmul.mubr.msk.f32.vlgmr.msra.gmra.mxu0 %vm1486_vm5, %v1474_v38 }
 0xb42   :  { %v1785_v39 = vpop.f32.mrf.mxu0 }
 0xb43   :  { %v1565_v40 = vadd.f32 %v1785_v39, %v1613_v50 }
 0xb44   :  { %v1559_v41 = vpop.f32.mrf.mxu0 }
 0xb45   :  { %1569 = vst.msk [vmem:[#allocation2 + $0x8] sm:$0xff] %vm1486_vm5, %v1565_v40  ;;  %v1560_v42 = vadd.f32 %v1613_v50, %v1559_v41 }
 0xb47   :  { %1568 = vst.msk [vmem:[#allocation2] sm:$0xff] %vm1486_vm5, %v1560_v42 }
 0xb48   :  { %1847 = shalt.err (!%p1844_p4)
}
 0xb49   :  { %s1875_s1 = smov 128  }
 0xb4a   :  { %1581 = dma.vmem_to_hbm [thread:$0]  %s1576_s19, 256, %s2113_s5, [#allocation3], %s1875_s1, %s1875_s1, %s1871_s6  }
 0xb4b   :  { %1856 = dma.done.wait [#allocation3], 256  }
 0xb4c   :  { %1857 = vsyncadd [#allocation3], 4294967040 }
 0xb4d   :  { %1585 = vsyncpa [#allocation3], 1 }

</bundles_post_ra>
